<compile_context>
chip_gen: v5e
topology: v5e:2x2
jax: 0.10.0
libtpu: 0.0.40
codegen_flags: <defaults>
</compile_context>

<pallas_src>
import functools

import jax
import jax.numpy as jnp
import numpy as np
from jax.experimental import pallas as pl
from jax.experimental.pallas import tpu as pltpu


# ----------------------------- Pallas kernel --------------------------------


def _detect_map_kernel(x_ref, w1_ref, w2_ref, w3_ref, t_ref, m_ref, o_ref,
                       *, H, W, Bblk):
    """Fused Bottleneck(Cin, Cp) + spatial softmax for Bblk images.

    x_ref  : (Cin, L)      input slab, channels-major, L = Bblk*H*W (bf16)
    w1_ref : (Cp, Cin)     conv1 weight, BN1-scaled                 (bf16)
    w2_ref : (Cp, 9*Cp)    conv2 taps stacked on K, BN2-scaled      (bf16)
    w3_ref : (Cp, Cp)      s3*(I + conv3 weight)  (residual folded) (bf16)
    t_ref  : (3, Cp, 1)    packed shifts [t1f, t2f, t3f]            (f32)
    m_ref  : (9, 1, L)     3x3-tap validity masks (trace-time built)
    o_ref  : (Cp, L)       softmax probabilities over each image's HW lanes
    """
    HW = H * W
    L = Bblk * HW

    t1 = t_ref[0]                      # (Cp, 1)  conv bias + BN shift folded
    t2 = t_ref[1]
    t3 = t_ref[2]

    # ---- conv1 (1x1) + BN1 + ReLU ----
    h1 = jnp.maximum(
        jnp.dot(w1_ref[...], x_ref[...], preferred_element_type=jnp.float32)
        + t1, 0.0)                                             # (Cp, L) f32

    # ---- conv2 (3x3, pad=1): 9 rolled taps -> ONE stacked MXU dot ----
    taps = []
    k = 0
    for dy in (-1, 0, 1):
        for dx in (-1, 0, 1):          # k = (dy+1)*3 + (dx+1), PyTorch order
            off = dy * W + dx          # flat per-image neighbour offset
            if off == 0:
                tap = h1
            else:
                # tap[:, j] = h1[:, j + off]; wrap-around / out-of-image /
                # cross-image positions are zeroed by the precomputed mask.
                tap = pltpu.roll(h1, (-off) % L, axis=1) * m_ref[k]
            taps.append(tap)
            k += 1
    taps = jnp.concatenate(taps, axis=0).astype(jnp.bfloat16)   # (9*Cp, L)
    h2 = jnp.maximum(
        jnp.dot(w2_ref[...], taps, preferred_element_type=jnp.float32)
        + t2, 0.0)                                             # (Cp, L) f32

    # ---- residual + conv3 + BN3 + ReLU (all folded into w3f / t3f) ----
    h3 = jnp.maximum(
        jnp.dot(w3_ref[...], h2.astype(jnp.bfloat16),
                preferred_element_type=jnp.float32) + t3, 0.0)  # (Cp, L) f32

    # ---- softmax over each image's HW lanes ----
    # (the module's "+ eps" is a constant logit shift -> exact no-op after
    #  max subtraction, so it is dropped.)
    for b in range(Bblk):              # static, lane-aligned 256-wide slices
        seg = h3[:, b * HW:(b + 1) * HW]
        mx = jnp.max(seg, axis=1, keepdims=True)
        e = jnp.exp(seg - mx)
        inv = pl.reciprocal(jnp.sum(e, axis=1, keepdims=True), approx=False)
        o_ref[:, b * HW:(b + 1) * HW] = e * inv


# ------------------------------- wrapper -------------------------------------


def _pick_block_batch(N):
    # Amortize ~0.35us/step grid overhead by batching images per step, but
    # keep >= 2 grid steps when N > 1 so both v7x TensorCores get work
    # (single-TC v5e/v6e are indifferent to the split).
    cap = N if N == 1 else max(1, N // 2)
    for b in (8, 4, 2, 1):
        if b <= cap and N % b == 0:
            return b
    return 1


def _conv2_tap_masks(H, W, Bblk):
    # Trace-time (numpy) validity masks for the 9 taps, tiled over the Bblk
    # images sharing one lane block.  k = (dy+1)*3 + (dx+1).
    hh = np.arange(H).reshape(H, 1)
    ww = np.arange(W).reshape(1, W)
    masks = []
    for dy in (-1, 0, 1):
        for dx in (-1, 0, 1):
            valid = ((hh + dy >= 0) & (hh + dy < H) &
                     (ww + dx >= 0) & (ww + dx < W))
            m = valid.astype(np.float32).reshape(1, H * W)
            masks.append(np.tile(m, (1, Bblk)))
    return np.stack(masks, axis=0)                    # (9, 1, Bblk*H*W)


@jax.jit
def to_detect_map_forward(x_nchw, params):
    """Forward pass of _to_detect_map. Input/output NCHW float32."""
    N, Cin, H, W = x_nchw.shape
    HW = H * W
    Cp = params["w1"].shape[0]
    Bblk = _pick_block_batch(N)
    L = Bblk * HW
    G = N // Bblk

    # ---- one-off folding: conv biases, BN scales, conv3 residual ----
    s1, s2, s3 = params["s1"], params["s2"], params["s3"]
    w1f = (params["w1"] * s1).astype(jnp.bfloat16)                 # (Cp, Cin)
    w2f = jnp.transpose(params["w2"] * s2[None, :, :], (1, 0, 2))  # (Cp, 9, Cp)
    w2f = w2f.reshape(Cp, 9 * Cp).astype(jnp.bfloat16)
    w3f = (s3 * (jnp.eye(Cp, dtype=jnp.float32)
                 + params["w3"])).astype(jnp.bfloat16)             # (Cp, Cp)
    tvec = jnp.stack([params["b1"] * s1 + params["t1"],
                      params["b2"] * s2 + params["t2"],
                      params["b3"] * s3 + params["t3"]], axis=0)   # (3, Cp, 1)

    masks = jnp.asarray(_conv2_tap_masks(H, W, Bblk))              # (9, 1, L)

    # channels-major slab: lane axis = (batch, spatial), lane-dense stores
    x2 = jnp.transpose(x_nchw.reshape(N, Cin, HW).astype(jnp.bfloat16),
                       (1, 0, 2)).reshape(Cin, N * HW)

    out2 = pl.pallas_call(
        functools.partial(_detect_map_kernel, H=H, W=W, Bblk=Bblk),
        out_shape=jax.ShapeDtypeStruct((Cp, N * HW), jnp.float32),
        grid=(G,),
        in_specs=[
            pl.BlockSpec((Cin, L), lambda n: (0, n)),
            pl.BlockSpec((Cp, Cin), lambda n: (0, 0)),
            pl.BlockSpec((Cp, 9 * Cp), lambda n: (0, 0)),
            pl.BlockSpec((Cp, Cp), lambda n: (0, 0)),
            pl.BlockSpec((3, Cp, 1), lambda n: (0, 0, 0)),
            pl.BlockSpec((9, 1, L), lambda n: (0, 0, 0)),
        ],
        out_specs=pl.BlockSpec((Cp, L), lambda n: (0, n)),
        # Per-step VMEM footprint is a few tens of KiB — far below every
        # generation's scoped default, so no vmem_limit_bytes needed.
        compiler_params=pltpu.CompilerParams(
            dimension_semantics=("parallel",)),
    )(x2, w1f, w2f, w3f, tvec, masks)

    return jnp.transpose(out2.reshape(Cp, N, HW), (1, 0, 2)).reshape(N, Cp, H, W)


# --------------------------- parameter init ----------------------------------


def init_params(key, class_num, inplanes=3):
    """Deterministic synthetic parameters matching the module's shapes.

    conv1: (Cp, Cin) 1x1   conv2: (9, Cp_out, Cp_in) taps, k = ky*3 + kx
    conv3: (Cp, Cp)  1x1   BN*: folded per-channel scale/shift (Cp, 1).
    """
    Cp = class_num
    ks = jax.random.split(key, 12)
    bn_eps = 1e-5

    def bn_affine(kg, kb):
        gamma = jax.random.uniform(kg, (Cp,), jnp.float32, 0.5, 1.5)
        beta = 0.1 * jax.random.normal(kb, (Cp,), jnp.float32)
        running_mean = jnp.zeros((Cp,), jnp.float32)
        running_var = jnp.ones((Cp,), jnp.float32)
        scale = gamma / jnp.sqrt(running_var + bn_eps)
        shift = beta - running_mean * scale
        return scale.reshape(Cp, 1), shift.reshape(Cp, 1)

    w1 = 0.3 * jax.random.normal(ks[0], (Cp, inplanes), jnp.float32)
    b1 = 0.05 * jax.random.normal(ks[1], (Cp,), jnp.float32).reshape(Cp, 1)
    s1, t1 = bn_affine(ks[2], ks[3])

    w2 = 0.2 * jax.random.normal(ks[4], (9, Cp, Cp), jnp.float32)
    b2 = 0.05 * jax.random.normal(ks[5], (Cp,), jnp.float32).reshape(Cp, 1)
    s2, t2 = bn_affine(ks[6], ks[7])

    w3 = 0.3 * jax.random.normal(ks[8], (Cp, Cp), jnp.float32)
    b3 = 0.05 * jax.random.normal(ks[9], (Cp,), jnp.float32).reshape(Cp, 1)
    s3, t3 = bn_affine(ks[10], ks[11])

    return dict(w1=w1, b1=b1, s1=s1, t1=t1,
                w2=w2, b2=b2, s2=s2, t2=t2,
                w3=w3, b3=b3, s3=s3, t3=t3)


# ------------------------- pure-JAX reference ---------------------------------


def reference_forward(x, params, eps=1e-11):
    Cp = params["w1"].shape[0]
    dn = ("NCHW", "OIHW", "NCHW")

    def bc(v):
        return v.reshape(1, Cp, 1, 1)

    y = jax.lax.conv_general_dilated(x, params["w1"][:, :, None, None],
                                     (1, 1), "VALID", dimension_numbers=dn)
    y = jnp.maximum((y + bc(params["b1"])) * bc(params["s1"]) + bc(params["t1"]), 0.0)

    w2 = jnp.transpose(params["w2"].reshape(3, 3, Cp, Cp), (2, 3, 0, 1))  # OIHW
    y = jax.lax.conv_general_dilated(y, w2, (1, 1), ((1, 1), (1, 1)),
                                     dimension_numbers=dn)
    y = jnp.maximum((y + bc(params["b2"])) * bc(params["s2"]) + bc(params["t2"]), 0.0)

    y3 = jax.lax.conv_general_dilated(y, params["w3"][:, :, None, None],
                                      (1, 1), "VALID", dimension_numbers=dn)
    y = y + y3 + bc(params["b3"])
    y = jnp.maximum(y * bc(params["s3"]) + bc(params["t3"]), 0.0)

    N, C, H, W = y.shape
    probs = jax.nn.softmax(y.reshape(N, C, H * W) + eps, axis=2)
    return probs.reshape(N, C, H, W)


# ----------------------------------- main -------------------------------------


if __name__ == "__main__":
    key = jax.random.PRNGKey(0)
    kx, kp = jax.random.split(key)

    class_num = 4
    x = jax.random.normal(kx, (2, 3, 16, 16), jnp.float32)   # NCHW, inplanes=3
    params = init_params(kp, class_num)

    out = jax.block_until_ready(to_detect_map_forward(x, params))
    ref = reference_forward(x, params)

    # Tolerance widened vs the pure-f32 reference because the kernel uses
    # bf16 MXU operands (explicit perf-feedback item); softmax normalization
    # itself is exact (approx=False reciprocal), checked below.
    np.testing.assert_allclose(np.asarray(out), np.asarray(ref),
                               rtol=3e-2, atol=2e-4)
    np.testing.assert_allclose(np.asarray(out).sum(axis=(2, 3)),
                               np.ones((2, class_num)), atol=1e-4)

    print("KERNEL_OK")
</pallas_src>

<mosaic_0001>
module attributes {stable_mosaic.version = 11 : i64} {
  func.func @_detect_map_kernel(%arg0: i32, %arg1: memref<3x256xbf16, #tpu.memory_space<vmem>>, %arg2: memref<4x3xbf16, #tpu.memory_space<vmem>>, %arg3: memref<4x36xbf16, #tpu.memory_space<vmem>>, %arg4: memref<4x4xbf16, #tpu.memory_space<vmem>>, %arg5: memref<3x4x1xf32, #tpu.memory_space<vmem>>, %arg6: memref<9x1x256xf32, #tpu.memory_space<vmem>>, %arg7: memref<4x256xf32, #tpu.memory_space<vmem>>) attributes {dimension_semantics = [#tpu.dimension_semantics<parallel>], iteration_bounds = array<i64: 2>, scalar_prefetch = 0 : i64, scratch_operands = 0 : i64, tpu.core_type = #tpu.core_type<tc>, window_params = [{transform_indices = @transform_0, window_bounds = array<i64: 3, 256>}, {pipeline_mode = #tpu.pipeline_mode<synchronous>, transform_indices = @transform_1, window_bounds = array<i64: 4, 3>}, {pipeline_mode = #tpu.pipeline_mode<synchronous>, transform_indices = @transform_2, window_bounds = array<i64: 4, 36>}, {pipeline_mode = #tpu.pipeline_mode<synchronous>, transform_indices = @transform_3, window_bounds = array<i64: 4, 4>}, {pipeline_mode = #tpu.pipeline_mode<synchronous>, transform_indices = @transform_4, window_bounds = array<i64: 3, 4, 1>}, {pipeline_mode = #tpu.pipeline_mode<synchronous>, transform_indices = @transform_5, window_bounds = array<i64: 9, 1, 256>}, {transform_indices = @transform_6, window_bounds = array<i64: 4, 256>}]} {
    %c0 = arith.constant 0 : index
    %c0_0 = arith.constant 0 : index
    %c0_1 = arith.constant 0 : index
    %0 = vector.load %arg5[%c0, %c0_0, %c0_1] : memref<3x4x1xf32, #tpu.memory_space<vmem>>, vector<1x4x1xf32>
    %1 = vector.shape_cast %0 : vector<1x4x1xf32> to vector<4x1xf32>
    %c1 = arith.constant 1 : index
    %c0_2 = arith.constant 0 : index
    %c0_3 = arith.constant 0 : index
    %2 = vector.load %arg5[%c1, %c0_2, %c0_3] : memref<3x4x1xf32, #tpu.memory_space<vmem>>, vector<1x4x1xf32>
    %3 = vector.shape_cast %2 : vector<1x4x1xf32> to vector<4x1xf32>
    %c2 = arith.constant 2 : index
    %c0_4 = arith.constant 0 : index
    %c0_5 = arith.constant 0 : index
    %4 = vector.load %arg5[%c2, %c0_4, %c0_5] : memref<3x4x1xf32, #tpu.memory_space<vmem>>, vector<1x4x1xf32>
    %5 = vector.shape_cast %4 : vector<1x4x1xf32> to vector<4x1xf32>
    %c0_6 = arith.constant 0 : index
    %c0_7 = arith.constant 0 : index
    %6 = vector.load %arg2[%c0_6, %c0_7] : memref<4x3xbf16, #tpu.memory_space<vmem>>, vector<4x3xbf16>
    %c0_8 = arith.constant 0 : index
    %c0_9 = arith.constant 0 : index
    %7 = vector.load %arg1[%c0_8, %c0_9] : memref<3x256xbf16, #tpu.memory_space<vmem>>, vector<3x256xbf16>
    %cst = arith.constant dense<0.000000e+00> : vector<4x256xf32>
    %8 = tpu.matmul %6, %7, %cst {dimension_numbers = #tpu.dot_dimension_numbers<[1], [0], [0], [1], [0, 0, 1, 1], [], []>} : vector<4x3xbf16>, vector<3x256xbf16>, vector<4x256xf32> -> vector<4x256xf32>
    %9 = vector.broadcast %1 : vector<4x1xf32> to vector<4x256xf32>
    %10 = arith.addf %8, %9 : vector<4x256xf32>
    %cst_10 = arith.constant 0.000000e+00 : f32
    %11 = vector.broadcast %cst_10 : f32 to vector<4x256xf32>
    %12 = arith.maximumf %10, %11 : vector<4x256xf32>
    %c17_i32 = arith.constant 17 : i32
    %13 = tpu.dynamic_rotate %12 by %c17_i32 dim 1 : vector<4x256xf32>, i32 -> vector<4x256xf32>
    %c0_11 = arith.constant 0 : index
    %c0_12 = arith.constant 0 : index
    %c0_13 = arith.constant 0 : index
    %14 = vector.load %arg6[%c0_11, %c0_12, %c0_13] : memref<9x1x256xf32, #tpu.memory_space<vmem>>, vector<1x1x256xf32>
    %15 = vector.shape_cast %14 : vector<1x1x256xf32> to vector<1x256xf32>
    %16 = vector.broadcast %15 : vector<1x256xf32> to vector<4x256xf32>
    %17 = arith.mulf %13, %16 : vector<4x256xf32>
    %c16_i32 = arith.constant 16 : i32
    %18 = tpu.dynamic_rotate %12 by %c16_i32 dim 1 : vector<4x256xf32>, i32 -> vector<4x256xf32>
    %c1_14 = arith.constant 1 : index
    %c0_15 = arith.constant 0 : index
    %c0_16 = arith.constant 0 : index
    %19 = vector.load %arg6[%c1_14, %c0_15, %c0_16] : memref<9x1x256xf32, #tpu.memory_space<vmem>>, vector<1x1x256xf32>
    %20 = vector.shape_cast %19 : vector<1x1x256xf32> to vector<1x256xf32>
    %21 = vector.broadcast %20 : vector<1x256xf32> to vector<4x256xf32>
    %22 = arith.mulf %18, %21 : vector<4x256xf32>
    %c15_i32 = arith.constant 15 : i32
    %23 = tpu.dynamic_rotate %12 by %c15_i32 dim 1 : vector<4x256xf32>, i32 -> vector<4x256xf32>
    %c2_17 = arith.constant 2 : index
    %c0_18 = arith.constant 0 : index
    %c0_19 = arith.constant 0 : index
    %24 = vector.load %arg6[%c2_17, %c0_18, %c0_19] : memref<9x1x256xf32, #tpu.memory_space<vmem>>, vector<1x1x256xf32>
    %25 = vector.shape_cast %24 : vector<1x1x256xf32> to vector<1x256xf32>
    %26 = vector.broadcast %25 : vector<1x256xf32> to vector<4x256xf32>
    %27 = arith.mulf %23, %26 : vector<4x256xf32>
    %c1_i32 = arith.constant 1 : i32
    %28 = tpu.dynamic_rotate %12 by %c1_i32 dim 1 : vector<4x256xf32>, i32 -> vector<4x256xf32>
    %c3 = arith.constant 3 : index
    %c0_20 = arith.constant 0 : index
    %c0_21 = arith.constant 0 : index
    %29 = vector.load %arg6[%c3, %c0_20, %c0_21] : memref<9x1x256xf32, #tpu.memory_space<vmem>>, vector<1x1x256xf32>
    %30 = vector.shape_cast %29 : vector<1x1x256xf32> to vector<1x256xf32>
    %31 = vector.broadcast %30 : vector<1x256xf32> to vector<4x256xf32>
    %32 = arith.mulf %28, %31 : vector<4x256xf32>
    %c255_i32 = arith.constant 255 : i32
    %33 = tpu.dynamic_rotate %12 by %c255_i32 dim 1 : vector<4x256xf32>, i32 -> vector<4x256xf32>
    %c5 = arith.constant 5 : index
    %c0_22 = arith.constant 0 : index
    %c0_23 = arith.constant 0 : index
    %34 = vector.load %arg6[%c5, %c0_22, %c0_23] : memref<9x1x256xf32, #tpu.memory_space<vmem>>, vector<1x1x256xf32>
    %35 = vector.shape_cast %34 : vector<1x1x256xf32> to vector<1x256xf32>
    %36 = vector.broadcast %35 : vector<1x256xf32> to vector<4x256xf32>
    %37 = arith.mulf %33, %36 : vector<4x256xf32>
    %c241_i32 = arith.constant 241 : i32
    %38 = tpu.dynamic_rotate %12 by %c241_i32 dim 1 : vector<4x256xf32>, i32 -> vector<4x256xf32>
    %c6 = arith.constant 6 : index
    %c0_24 = arith.constant 0 : index
    %c0_25 = arith.constant 0 : index
    %39 = vector.load %arg6[%c6, %c0_24, %c0_25] : memref<9x1x256xf32, #tpu.memory_space<vmem>>, vector<1x1x256xf32>
    %40 = vector.shape_cast %39 : vector<1x1x256xf32> to vector<1x256xf32>
    %41 = vector.broadcast %40 : vector<1x256xf32> to vector<4x256xf32>
    %42 = arith.mulf %38, %41 : vector<4x256xf32>
    %c240_i32 = arith.constant 240 : i32
    %43 = tpu.dynamic_rotate %12 by %c240_i32 dim 1 : vector<4x256xf32>, i32 -> vector<4x256xf32>
    %c7 = arith.constant 7 : index
    %c0_26 = arith.constant 0 : index
    %c0_27 = arith.constant 0 : index
    %44 = vector.load %arg6[%c7, %c0_26, %c0_27] : memref<9x1x256xf32, #tpu.memory_space<vmem>>, vector<1x1x256xf32>
    %45 = vector.shape_cast %44 : vector<1x1x256xf32> to vector<1x256xf32>
    %46 = vector.broadcast %45 : vector<1x256xf32> to vector<4x256xf32>
    %47 = arith.mulf %43, %46 : vector<4x256xf32>
    %c239_i32 = arith.constant 239 : i32
    %48 = tpu.dynamic_rotate %12 by %c239_i32 dim 1 : vector<4x256xf32>, i32 -> vector<4x256xf32>
    %c8 = arith.constant 8 : index
    %c0_28 = arith.constant 0 : index
    %c0_29 = arith.constant 0 : index
    %49 = vector.load %arg6[%c8, %c0_28, %c0_29] : memref<9x1x256xf32, #tpu.memory_space<vmem>>, vector<1x1x256xf32>
    %50 = vector.shape_cast %49 : vector<1x1x256xf32> to vector<1x256xf32>
    %51 = vector.broadcast %50 : vector<1x256xf32> to vector<4x256xf32>
    %52 = arith.mulf %48, %51 : vector<4x256xf32>
    %53 = tpu.concatenate %17, %22, %27, %32, %12, %37, %42, %47, %52 in 0 : vector<4x256xf32>, vector<4x256xf32>, vector<4x256xf32>, vector<4x256xf32>, vector<4x256xf32>, vector<4x256xf32>, vector<4x256xf32>, vector<4x256xf32>, vector<4x256xf32> -> vector<36x256xf32>
    %54 = arith.truncf %53 : vector<36x256xf32> to vector<36x256xbf16>
    %c0_30 = arith.constant 0 : index
    %c0_31 = arith.constant 0 : index
    %55 = vector.load %arg3[%c0_30, %c0_31] : memref<4x36xbf16, #tpu.memory_space<vmem>>, vector<4x36xbf16>
    %cst_32 = arith.constant dense<0.000000e+00> : vector<4x256xf32>
    %56 = tpu.matmul %55, %54, %cst_32 {dimension_numbers = #tpu.dot_dimension_numbers<[1], [0], [0], [1], [0, 0, 1, 1], [], []>} : vector<4x36xbf16>, vector<36x256xbf16>, vector<4x256xf32> -> vector<4x256xf32>
    %57 = vector.broadcast %3 : vector<4x1xf32> to vector<4x256xf32>
    %58 = arith.addf %56, %57 : vector<4x256xf32>
    %cst_33 = arith.constant 0.000000e+00 : f32
    %59 = vector.broadcast %cst_33 : f32 to vector<4x256xf32>
    %60 = arith.maximumf %58, %59 : vector<4x256xf32>
    %c0_34 = arith.constant 0 : index
    %c0_35 = arith.constant 0 : index
    %61 = vector.load %arg4[%c0_34, %c0_35] : memref<4x4xbf16, #tpu.memory_space<vmem>>, vector<4x4xbf16>
    %62 = arith.truncf %60 : vector<4x256xf32> to vector<4x256xbf16>
    %cst_36 = arith.constant dense<0.000000e+00> : vector<4x256xf32>
    %63 = tpu.matmul %61, %62, %cst_36 {dimension_numbers = #tpu.dot_dimension_numbers<[1], [0], [0], [1], [0, 0, 1, 1], [], []>} : vector<4x4xbf16>, vector<4x256xbf16>, vector<4x256xf32> -> vector<4x256xf32>
    %64 = vector.broadcast %5 : vector<4x1xf32> to vector<4x256xf32>
    %65 = arith.addf %63, %64 : vector<4x256xf32>
    %cst_37 = arith.constant 0.000000e+00 : f32
    %66 = vector.broadcast %cst_37 : f32 to vector<4x256xf32>
    %67 = arith.maximumf %65, %66 : vector<4x256xf32>
    %cst_38 = arith.constant dense<0xFF800000> : vector<4xf32>
    %68 = vector.multi_reduction <maximumf>, %67, %cst_38 [1] : vector<4x256xf32> to vector<4xf32>
    %69 = vector.shape_cast %68 : vector<4xf32> to vector<4x1xf32>
    %70 = vector.broadcast %69 : vector<4x1xf32> to vector<4x256xf32>
    %71 = arith.subf %67, %70 : vector<4x256xf32>
    %72 = math.exp %71 : vector<4x256xf32>
    %cst_39 = arith.constant dense<0.000000e+00> : vector<4xf32>
    %73 = vector.multi_reduction <add>, %72, %cst_39 [1] : vector<4x256xf32> to vector<4xf32>
    %74 = vector.shape_cast %73 : vector<4xf32> to vector<4x1xf32>
    %75 = tpu.reciprocal %74 : vector<4x1xf32> -> vector<4x1xf32>
    %76 = vector.broadcast %75 : vector<4x1xf32> to vector<4x256xf32>
    %77 = arith.mulf %72, %76 : vector<4x256xf32>
    %c0_40 = arith.constant 0 : index
    %c0_41 = arith.constant 0 : index
    %78 = vector.load %arg7[%c0_40, %c0_41] : memref<4x256xf32, #tpu.memory_space<vmem>>, vector<4x256xf32>
    tpu.vector_store %arg7[%c0_40, %c0_41], %77 {strides = array<i32>} : memref<4x256xf32, #tpu.memory_space<vmem>>, vector<4x256xf32>,
    return
  }
  func.func @transform_0(%arg0: i32) -> (i32, i32) {
    %c0_i32 = arith.constant 0 : i32
    %c0_i32_0 = arith.constant 0 : i32
    return %c0_i32, %arg0 : i32, i32
  }
  func.func @transform_1(%arg0: i32) -> (i32, i32) {
    %c0_i32 = arith.constant 0 : i32
    %c0_i32_0 = arith.constant 0 : i32
    %c0_i32_1 = arith.constant 0 : i32
    return %c0_i32, %c0_i32_0 : i32, i32
  }
  func.func @transform_2(%arg0: i32) -> (i32, i32) {
    %c0_i32 = arith.constant 0 : i32
    %c0_i32_0 = arith.constant 0 : i32
    %c0_i32_1 = arith.constant 0 : i32
    return %c0_i32, %c0_i32_0 : i32, i32
  }
  func.func @transform_3(%arg0: i32) -> (i32, i32) {
    %c0_i32 = arith.constant 0 : i32
    %c0_i32_0 = arith.constant 0 : i32
    %c0_i32_1 = arith.constant 0 : i32
    return %c0_i32, %c0_i32_0 : i32, i32
  }
  func.func @transform_4(%arg0: i32) -> (i32, i32, i32) {
    %c0_i32 = arith.constant 0 : i32
    %c0_i32_0 = arith.constant 0 : i32
    %c0_i32_1 = arith.constant 0 : i32
    %c0_i32_2 = arith.constant 0 : i32
    return %c0_i32, %c0_i32_0, %c0_i32_1 : i32, i32, i32
  }
  func.func @transform_5(%arg0: i32) -> (i32, i32, i32) {
    %c0_i32 = arith.constant 0 : i32
    %c0_i32_0 = arith.constant 0 : i32
    %c0_i32_1 = arith.constant 0 : i32
    %c0_i32_2 = arith.constant 0 : i32
    return %c0_i32, %c0_i32_0, %c0_i32_1 : i32, i32, i32
  }
  func.func @transform_6(%arg0: i32) -> (i32, i32) {
    %c0_i32 = arith.constant 0 : i32
    %c0_i32_0 = arith.constant 0 : i32
    return %c0_i32, %arg0 : i32, i32
  }
}

</mosaic_0001>

<bundles_post_ra>
// kernel: to_detect_map_forward.1
= control target key start
LH: loop header
LB: loop body
LE: loop exit
PB: predicated region body
PF: predicated region fallthrough
CT: control target
= control target key end

     0   :  { %s769_s21 = smov 0   ;;  %s886_s0 = inlined_call_operand.vmem [shape: bf16[3,512], index: 0, kind: input, shape index: {}]   ;;  %s887_s1 = inlined_call_operand.vmem [shape: bf16[4,3], index: 1, kind: input, shape index: {}]   ;;  %s888_s2 = inlined_call_operand.vmem [shape: bf16[4,36], index: 2, kind: input, shape index: {}]   ;;  %s889_s3 = inlined_call_operand.vmem [shape: bf16[4,4], index: 3, kind: input, shape index: {}]   ;;  %s890_s4 = inlined_call_operand.vmem [shape: f32[3,4,1], index: 4, kind: input, shape index: {}]   ;;  %s891_s5 = inlined_call_operand.vmem [shape: f32[9,1,256], index: 5, kind: input, shape index: {}]   ;;  %s892_s6 = inlined_call_operand.vmem [shape: f32[4,512], index: 6, kind: output, shape index: {}]  }
   0x1 LB: > { %s664_s22 = sadd.s32 4294967295, %s722_s21   ;;  %p668_p0 = scmp.ge.s32.totalorder %s722_s21, 1  ;;  %s722_s21 = sphi %s769_s21, %s16_s21  }
   0x2   : > { %p213_p1 = scmp.lt.s32.totalorder %s722_s21, 3 }
   0x4   : > { %p214_p2 = pnand %p668_p0, %p213_p1 }
   0x5   : > { %s669_s23 = sshll.u32 (!%p214_p2), %s664_s22, 1  ;;  %s726_s8 = smov (!%p214_p2), 127  }
   0x6   : > { %217 = sbr.rel (%p214_p2) target bundleno = 867 (0x363), region = 44  ;;  %p244_p3 = scmp.lt.s32.totalorder (!%p214_p2), %s669_s23, 3 }
   0x7   : > { %s727_s9 = smov (!%p214_p2), 111   ;;  %s728_s10 = smov (!%p214_p2), 112  }
   0x8   : > { %s729_s11 = smov (!%p214_p2), 113   ;;  %s730_s12 = smov (!%p214_p2), 16  }
   0x9   : > { %s731_s13 = smov (!%p214_p2), 1   ;;  %s732_s14 = smov (!%p214_p2), 17  }
   0xa   : > { %s733_s15 = smov (!%p214_p2), 15  }
   0xb   : > { %v256_v0 = vld [vmem:[%s890_s4] sm:$0xf]  ;;  %v724_v1 = vmov 0   ;;  %s894_s23 = smov (!%p244_p3, %s669_s23), 3  ;;  %vm276_vm0 = vcmask 1040384   ;;  %vm277_vm1 = vcmask 1041408   ;;  %v316_v21 = vlaneseq }
   0xc   : > { %708 = vset.pattern.permute.xlu0 %v724_v1  ;;  %709 = vset.pattern.permute.xlu2 %v724_v1  ;;  %s670_s26 = sshll.u32 %s894_s23, 1  ;;  %v725_v3 = vmov 65535   ;;  %v261_v10 = vld [vmem:[%s887_s1] sm:$0x3]  ;;  %vm272_vm2 = vcmask 23552   ;;  %vm465_vm7 = vcmask 1043456  }
   0xd   : > { %265 = vperm.xlu0 %708, %v256_v0   ;;  %s247_s29 = scalar_lea.vmem %s886_s0, %s670_s26  ;;  %v278_v4 = vsel %vm276_vm0, 4294967295, %v725_v3  ;;  %v674_v20 = vld [vmem:[%s890_s4 + $0x8] sm:$0xf]  ;;  %v813_v22 = vand.u32 127, %v316_v21  ;;  %v683_v24 = vld [vmem:[%s891_s5 + $0x10] sm:$0x3] }
   0xe   : > { %v262_v2 = vld [vmem:[%s247_s29] sm:$0xf]  ;;  %v279_v5 = vsel %vm277_vm1, %v278_v4, 0  ;;  %v435_v25 = vperm.slane %v683_v24, 0  ;;  %v436_v26 = vperm.slane %v683_v24, 1  ;;  %vm486_vm12 = vcmask 293888  }
   0xf   : > { %269 = vst [vmem:[#allocation1] ss:$4 sm:$0xff] %v262_v2  ;;  %vm429_vm3 = vcmp.lt.s32.totalorder %v813_v22, 111  ;;  %v680_v35 = vld [vmem:[%s891_s5 + $0xa] sm:$0x3]  ;;  %vm381_vm4 = vcmp.lt.s32.totalorder %v813_v22, 127 }
  0x10   : > { %v682_v39 = vld [vmem:[%s891_s5 + $0xe] sm:$0x3]  ;;  %v387_v40 = vperm.slane %v680_v35, 0  ;;  %v388_v41 = vperm.slane %v680_v35, 1  ;;  %vm413_vm5 = vcmp.lt.s32.totalorder %v813_v22, 112  ;;  %vm397_vm6 = vcmp.lt.s32.totalorder %v813_v22, 113 }
  0x11   : > { %v419_v46 = vperm.slane %v682_v39, 0  ;;  %v420_v47 = vperm.slane %v682_v39, 1  ;;  %v681_v50 = vld [vmem:[%s891_s5 + $0xc] sm:$0x3]  ;;  %v673_v3 = vld [vmem:[%s890_s4 + $0x4] sm:$0xf] }
  0x12   : > { %v403_v55 = vperm.slane %v681_v50, 0  ;;  %v404_v56 = vperm.slane %v681_v50, 1  ;;  %vm333_vm8 = vcmp.lt.s32.totalorder %v813_v22, 16  ;;  %vm365_vm9 = vcmp.lt.s32.totalorder %v813_v22, 1  ;;  %s672_s18 = sshll.u32 %s894_s23, 2 }
  0x13   : > { %vm318_vm10 = vcmp.lt.s32.totalorder %v813_v22, 17  ;;  %vm349_vm11 = vcmp.lt.s32.totalorder %v813_v22, 15  ;;  %v480_v22 = vld [vmem:[%s888_s2] sm:$0x3]  ;;  %vm532_vm13 = vcmask 31744   ;;  %s253_s22 = scalar_lea.vmem %s892_s6, %s672_s18 }
  0x16   : > { %v270_v6 = vld.sshfl [vmem:[#allocation1] sm:$0xff pattern:$0x73625140]  ;;  %v271_v7 = vld.sshfl [vmem:[#allocation1 + $0x8] sm:$0xff pattern:$0x73625140] }
  0x17   : > { %v280_v8 = vand.u32 %v279_v5, %v270_v6  ;;  %v282_v9 = vand.u32 %v279_v5, %v271_v7 }
  0x19   : > { %291 = vmatpush.bf16.msra.mxu0 %v280_v8  ;;  %304 = vmatpush.bf16.msra.mxu1 %v282_v9 }
  0x1c   : > { %675 = vmatmul.msk.bf16.vlgmr.msra.gmra.mxu0 %vm272_vm2, %v261_v10  ;;  %676 = vmatmul.msk.bf16.vlgmr.msra.gmra.mxu1 %vm272_vm2, %v261_v10 }
  0x7f   : > { %v266_v11 = vpop.permute.xlu0 %265 }
  0x99   : > { %v293_v12 = vpop.f32.mrf.mxu0  ;;  %v306_v13 = vpop.f32.mrf.mxu1 }
  0x9a   : > { %v294_v14 = vadd.f32 %v293_v12, %v266_v11  ;;  %v307_v15 = vadd.f32 %v306_v13, %v266_v11  ;;  %v677_v13 = vld [vmem:[%s891_s5 + $0x2] sm:$0x3] }
  0x9c   : > { %v790_v16 = vmax.f32 %v294_v14, 0.0  ;;  %v792_v17 = vmax.f32 %v307_v15, 0.0  ;;  %v679_v14 = vld [vmem:[%s891_s5 + $0x6] sm:$0x3] }
  0x9d   : > { %v372_v24 = vperm.slane %v679_v14, 1 }
  0x9e   : > { %379 = vrot.lane.b32.xlu2 %v792_v17, %s726_s8  ;;  %427 = vrot.lane.b32.xlu1 %v792_v17, %s727_s9 }
  0x9f   : > { %425 = vrot.lane.b32.xlu0 %v790_v16, %s727_s9 }
  0xa1   : > { %v295_v18 = vpop.f32.mrf.mxu0  ;;  %v308_v19 = vpop.f32.mrf.mxu1 }
  0xa2   : > { %v340_v18 = vperm.slane %v677_v13, 1  ;;  %v371_v19 = vperm.slane %v679_v14, 0 }
  0xa6   : > { %409 = vrot.lane.b32.xlu2 %v790_v16, %s728_s10  ;;  %377 = vrot.lane.b32.xlu1 %v790_v16, %s726_s8 }
  0xa7   : > { %411 = vrot.lane.b32.xlu0 %v792_v17, %s728_s10 }
  0xae   : > { %395 = vrot.lane.b32.xlu2 %v792_v17, %s729_s11  ;;  %393 = vrot.lane.b32.xlu1 %v790_v16, %s729_s11 }
  0xaf   : > { %329 = vrot.lane.b32.xlu0 %v790_v16, %s730_s12 }
  0xb6   : > { %361 = vrot.lane.b32.xlu2 %v790_v16, %s731_s13  ;;  %331 = vrot.lane.b32.xlu1 %v792_v17, %s730_s12 }
  0xb7   : > { %363 = vrot.lane.b32.xlu0 %v792_v17, %s731_s13 }
  0xbe   : > { %314 = vrot.lane.b32.xlu2 %v792_v17, %s732_s14  ;;  %312 = vrot.lane.b32.xlu1 %v790_v16, %s732_s14 }
  0xbf   : > { %345 = vrot.lane.b32.xlu0 %v790_v16, %s733_s15 }
  0xc6   : > { %347 = vrot.lane.b32.xlu1 %v792_v17, %s733_s15  ;;  %483 = vperm.xlu2 %709, %v673_v3  }
  0xc7   : > { %529 = vperm.xlu0 %708, %v674_v20   ;;  %v321_v20 = vld [vmem:[%s891_s5] sm:$0x3] }
  0xf8   : > { %v380_v23 = vpop.permute.xlu2 %379 }
 0x100   : > { %v410_v36 = vpop.permute.xlu2 %409 }
 0x108   : > { %v396_v57 = vpop.permute.xlu2 %395 }
 0x110   : > { %v428_v27 = vpop.permute.xlu1 %427  ;;  %v362_v12 = vpop.permute.xlu2 %361 }
 0x111   : > { %v426_v28 = vpop.permute.xlu0 %425 }
 0x112   : > { %v430_v29 = vsel %vm429_vm3, %v426_v28, %v428_v27  ;;  %v431_v30 = vsel %vm429_vm3, %v428_v27, %v426_v28  ;;  %v678_v27 = vld [vmem:[%s891_s5 + $0x4] sm:$0x3] }
 0x113   : > { %v439_v31 = vmul.f32 %v435_v25, %v430_v29  ;;  %v440_v32 = vmul.f32 %v436_v26, %v431_v30  ;;  %v323_v29 = vperm.slane %v321_v20, 0  ;;  %v324_v30 = vperm.slane %v321_v20, 1 }
 0x115   : > { %v478_v33 = vpack.c.bf16 %v439_v31, %v439_v31  ;;  %v479_v34 = vpack.c.bf16 %v440_v32, %v440_v32 }
 0x117   : > { %v491_v37 = vsel %vm277_vm1, %v478_v33, 0  ;;  %v494_v38 = vsel %vm277_vm1, %v479_v34, 0 }
 0x118   : > { %501 = vmatpush.bf16.msra.mxu2 %v491_v37  ;;  %514 = vmatpush.bf16.msra.mxu3 %v494_v38  ;;  %v378_v42 = vpop.permute.xlu1 %377  ;;  %v315_v28 = vpop.permute.xlu2 %314  ;;  %v355_v37 = vperm.slane %v678_v27, 0  ;;  %v356_v38 = vperm.slane %v678_v27, 1 }
 0x119   : > { %v382_v43 = vsel %vm381_vm4, %v378_v42, %v380_v23  ;;  %v383_v44 = vsel %vm381_vm4, %v380_v23, %v378_v42  ;;  %v412_v45 = vpop.permute.xlu0 %411 }
 0x11a   : > { %v414_v48 = vsel %vm413_vm5, %v410_v36, %v412_v45  ;;  %v415_v49 = vsel %vm413_vm5, %v412_v45, %v410_v36  ;;  %v391_v51 = vmul.f32 %v387_v40, %v382_v43  ;;  %v392_v52 = vmul.f32 %v388_v41, %v383_v44 }
 0x11b   : > { %v423_v53 = vmul.f32 %v419_v46, %v414_v48  ;;  %v424_v54 = vmul.f32 %v420_v47, %v415_v49 }
 0x11c   : > { %v455_v58 = vrot.slane %v391_v51, 4  ;;  %v456_v59 = vrot.slane %v392_v52, 4 }
 0x11d   : > { %v461_v63 = vrot.slane %v423_v53, 4  ;;  %v462_v0 = vrot.slane %v424_v54, 4 }
 0x11e   : > { %v470_v5 = vsel %vm465_vm7, %v790_v16, %v455_v58  ;;  %v471_v7 = vsel %vm465_vm7, %v792_v17, %v456_v59  ;;  %v339_v17 = vperm.slane %v677_v13, 0 }
 0x120   : > { %v394_v60 = vpop.permute.xlu1 %393 }
 0x121   : > { %v398_v61 = vsel %vm397_vm6, %v394_v60, %v396_v57  ;;  %v399_v62 = vsel %vm397_vm6, %v396_v57, %v394_v60  ;;  %v330_v4 = vpop.permute.xlu0 %329  ;;  %v484_v57 = vpop.permute.xlu2 %483 }
 0x122   : > { %v407_v1 = vmul.f32 %v403_v55, %v398_v61  ;;  %v408_v2 = vmul.f32 %v404_v56, %v399_v62 }
 0x124   : > { %v472_v6 = vsel %vm465_vm7, %v407_v1, %v461_v63  ;;  %v473_v8 = vsel %vm465_vm7, %v408_v2, %v462_v0 }
 0x125   : > { %v476_v9 = vpack.c.bf16 %v472_v6, %v470_v5  ;;  %v477_v10 = vpack.c.bf16 %v473_v8, %v471_v7  ;;  %v524_v6 = vld [vmem:[%s889_s3] sm:$0x3] }
 0x127   : > { %502 = vmatpush.bf16.msra.mxu2 %v476_v9  ;;  %515 = vmatpush.bf16.msra.mxu3 %v477_v10 }
 0x128   : > { %v332_v11 = vpop.permute.xlu1 %331 }
 0x129   : > { %v364_v15 = vpop.permute.xlu0 %363  ;;  %v334_v21 = vsel %vm333_vm8, %v330_v4, %v332_v11  ;;  %v335_v23 = vsel %vm333_vm8, %v332_v11, %v330_v4 }
 0x12a   : > { %v366_v25 = vsel %vm365_vm9, %v362_v12, %v364_v15  ;;  %v367_v26 = vsel %vm365_vm9, %v364_v15, %v362_v12  ;;  %v343_v31 = vmul.f32 %v339_v17, %v335_v23  ;;  %v344_v32 = vmul.f32 %v340_v18, %v334_v21 }
 0x12b   : > { %v375_v35 = vmul.f32 %v371_v19, %v367_v26  ;;  %v376_v36 = vmul.f32 %v372_v24, %v366_v25 }
 0x12c   : > { %v443_v43 = vrot.slane %v343_v31, 4  ;;  %v444_v44 = vrot.slane %v344_v32, 4 }
 0x12d   : > { %v449_v47 = vrot.slane %v375_v35, 4  ;;  %v450_v48 = vrot.slane %v376_v36, 4 }
 0x130   : > { %v313_v16 = vpop.permute.xlu1 %312 }
 0x131   : > { %v319_v33 = vsel %vm318_vm10, %v313_v16, %v315_v28  ;;  %v320_v34 = vsel %vm318_vm10, %v315_v28, %v313_v16  ;;  %v346_v41 = vpop.permute.xlu0 %345 }
 0x132   : > { %v327_v39 = vmul.f32 %v323_v29, %v320_v34  ;;  %v328_v40 = vmul.f32 %v324_v30, %v319_v33 }
 0x134   : > { %v466_v51 = vsel %vm465_vm7, %v327_v39, %v443_v43  ;;  %v467_v53 = vsel %vm465_vm7, %v328_v40, %v444_v44 }
 0x138   : > { %v348_v42 = vpop.permute.xlu1 %347 }
 0x139   : > { %v350_v45 = vsel %vm349_vm11, %v346_v41, %v348_v42  ;;  %v351_v46 = vsel %vm349_vm11, %v348_v42, %v346_v41  ;;  %v530_v7 = vpop.permute.xlu0 %529 }
 0x13a   : > { %v359_v49 = vmul.f32 %v355_v37, %v351_v46  ;;  %v360_v50 = vmul.f32 %v356_v38, %v350_v45 }
 0x13c   : > { %v468_v52 = vsel %vm465_vm7, %v359_v49, %v449_v47  ;;  %v469_v54 = vsel %vm465_vm7, %v360_v50, %v450_v48 }
 0x13d   : > { %v474_v55 = vpack.c.bf16 %v468_v52, %v466_v51  ;;  %v475_v56 = vpack.c.bf16 %v469_v54, %v467_v53 }
 0x13f   : > { %503 = vmatpush.bf16.msra.mxu2 %v474_v55  ;;  %516 = vmatpush.bf16.msra.mxu3 %v475_v56 }
 0x142   : > { %684 = vmatmul.msk.bf16.vlgmr.msra.gmra.mxu2 %vm486_vm12, %v480_v22  ;;  %685 = vmatmul.msk.bf16.vlgmr.msra.gmra.mxu3 %vm486_vm12, %v480_v22 }
 0x1c5   : > { %v505_v58 = vpop.f32.mrf.mxu2  ;;  %v518_v59 = vpop.f32.mrf.mxu3 }
 0x1c6   : > { %v506_v60 = vadd.f32 %v505_v58, %v484_v57  ;;  %v519_v61 = vadd.f32 %v518_v59, %v484_v57 }
 0x1c8   : > { %v522_v62 = vmax.f32 %v506_v60, 0.0  ;;  %v523_v63 = vmax.f32 %v519_v61, 0.0 }
 0x1ca   : > { %v525_v0 = vpack.c.bf16 %v522_v62, %v522_v62  ;;  %v526_v1 = vpack.c.bf16 %v523_v63, %v523_v63 }
 0x1cc   : > { %v537_v2 = vsel %vm277_vm1, %v525_v0, 0  ;;  %v540_v3 = vsel %vm277_vm1, %v526_v1, 0 }
 0x1cd   : > { %v507_v4 = vpop.f32.mrf.mxu2  ;;  %v520_v5 = vpop.f32.mrf.mxu3  ;;  %549 = vmatpush.bf16.msrb.mxu0 %v537_v2  ;;  %562 = vmatpush.bf16.msrb.mxu1 %v540_v3 }
 0x1d0   : > { %686 = vmatmul.msk.bf16.vlgmr.msrb.gmra.mxu0 %vm532_vm13, %v524_v6  ;;  %687 = vmatmul.msk.bf16.vlgmr.msrb.gmra.mxu1 %vm532_vm13, %v524_v6 }
 0x24d   : > { %v551_v8 = vpop.f32.mrf.mxu0  ;;  %v564_v9 = vpop.f32.mrf.mxu1 }
 0x24e   : > { %v552_v10 = vadd.f32 %v551_v8, %v530_v7  ;;  %v565_v11 = vadd.f32 %v564_v9, %v530_v7 }
 0x250   : > { %v568_v12 = vmax.f32 %v552_v10, 0.0  ;;  %v569_v13 = vmax.f32 %v565_v11, 0.0 }
 0x252   : > { %v570_v14 = vsel %vm465_vm7, %v568_v12, -inf  ;;  %v571_v15 = vsel %vm465_vm7, %v569_v13, -inf }
 0x253   : > { %v572_v16 = vmax.f32 %v570_v14, %v571_v15 }
 0x255   : > { %573 = vmax.xlane.f32.xlu1 %v572_v16  ;;  %v553_v17 = vpop.f32.mrf.mxu0  ;;  %v566_v18 = vpop.f32.mrf.mxu1 }
 0x2c8   : > { %v574_v19 = vpop.xlane.xlu1 %573 }
 0x2c9   : > { %v575_v20 = vsub.f32 %v568_v12, %v574_v19  ;;  %v576_v21 = vsub.f32 %v569_v13, %v574_v19 }
 0x2cb   : > { %v577_v23 = vmul.f32 1.442695, %v575_v20  ;;  %v579_v24 = vmul.f32 1.442695, %v576_v21 }
 0x2cd   : > { %710 = vpow2.f32 %v577_v23 }
 0x2ce   : > { %712 = vpow2.f32 %v579_v24 }
 0x2d3   : > { %v711_v25 = vpop.eup %710 }
 0x2d4   : > { %v713_v26 = vpop.eup %712  ;;  %v581_v27 = vsel %vm465_vm7, %v711_v25, 0.0 }
 0x2d5   : > { %v582_v28 = vsel %vm465_vm7, %v713_v26, 0.0 }
 0x2d6   : > { %v583_v29 = vadd.f32 %v582_v28, %v581_v27 }
 0x2d8   : > { %584 = vadd.xlane.f32.xlu2 %v583_v29 }
 0x34b   : > { %v585_v30 = vpop.xlane.xlu2 %584 }
 0x34c   : > { %714 = vrcp.f32 %v585_v30  ;;  %v597_v34 = vand.u32 2147483648, %v585_v30  ;;  %v595_v36 = vand.u32 2147483647, %v585_v30  ;;  %vm591_vm15 = vweird.f32 %v585_v30 }
 0x34e   : > { %v598_v38 = vor.u32 1.1754944e-38, %v597_v34  ;;  %vm596_vm1 = vcmp.eq.f32.partialorder %v595_v36, 8.507059e+37 }
 0x352   : > { %v715_v31 = vpop.eup %714 }
 0x353   : > { %v587_v32 = vmul.f32 %v715_v31, %v585_v30  ;;  %vm592_vm14 = vweird.f32 %v715_v31 }
 0x354   : > { %vm593_vm0 = vmor %vm591_vm15, %vm592_vm14 }
 0x355   : > { %v588_v33 = vsub.f32 1.0, %v587_v32 }
 0x357   : > { %v589_v35 = vmul.f32 %v715_v31, %v588_v33 }
 0x359   : > { %v590_v37 = vadd.f32 %v715_v31, %v589_v35 }
 0x35b   : > { %v594_v39 = vsel %vm593_vm0, %v715_v31, %v590_v37 }
 0x35c   : > { %v599_v40 = vsel %vm596_vm1, %v598_v38, %v594_v39 }
 0x35d   : > { %v601_v41 = vmul.f32 %v713_v26, %v599_v40  ;;  %v600_v42 = vmul.f32 %v711_v25, %v599_v40 }
 0x35f   : > { %v604_v43 = vrot.slane %v601_v41, 4 }
 0x361   : > { %v605_v44 = vsel %vm465_vm7, %v600_v42, %v604_v43 }
 0x362   : > { %607 = vst [vmem:[%s253_s22] sm:$0xff] %v605_v44 }
 0x363 PF: > { %s16_s21 = sadd.s32 1, %s722_s21  }
 0x364   : > { %p13_p4 = scmp.ge.s32.totalorder %s16_s21, 4  }
 0x366   :  { %15 = sbr.rel (!%p13_p4) target bundleno = 1 (0x1), region = 83 }

</bundles_post_ra>
